<compile_context>
chip_gen: v7x
topology: tpu7x:2x2x1
jax: 0.10.0
libtpu: 0.0.40
codegen_flags: <defaults>
</compile_context>

<pallas_src>
import jax
import jax.numpy as jnp
from jax.experimental import pallas as pl
from jax.experimental.pallas import tpu as pltpu

_LANE = 1024          # lane-dense last dim (multiple of 128) -> unmasked vector stores
_SUBLANE = 8
_MAX_TILE_ROWS = 512  # 512*1024*4B = 2 MiB/block; in+out double-buffered ~= 8 MiB (fits
                      # v5e 16 MiB / v6e 32 MiB default scoped VMEM and v7x 64 MiB phys.)


def _mix32(h):
    """murmur3 fmix32-style avalanche on uint32 lanes (pure VPU ops)."""
    h = h ^ (h >> 16)
    h = h * jnp.uint32(0x85EBCA6B)
    h = h ^ (h >> 13)
    h = h * jnp.uint32(0xC2B2AE35)
    h = h ^ (h >> 16)
    return h


def _poisson_kernel(seed_ref, x_ref, o_ref):
    tile_r, lane = x_ref.shape
    # Stateless counter-based PRNG keyed by (seed, global element index): independent
    # random bits for every grid block / TensorCore, no mutable PRNG state.
    seed = seed_ref[0].astype(jnp.uint32)
    block = pl.program_id(0).astype(jnp.uint32)
    row = jax.lax.broadcasted_iota(jnp.uint32, (tile_r, lane), 0)
    col = jax.lax.broadcasted_iota(jnp.uint32, (tile_r, lane), 1)
    idx = block * jnp.uint32(tile_r * lane) + row * jnp.uint32(lane) + col
    h = idx * jnp.uint32(0x9E3779B9) + seed * jnp.uint32(0x7FEB352D) + jnp.uint32(1)
    h = _mix32(h)
    h = _mix32(h ^ jnp.uint32(0x68E31DA4))
    # 24 random bits -> uniform [0, 1).  (Go via int32: values < 2^24 so it is exact.)
    u = (h >> 8).astype(jnp.int32).astype(jnp.float32) * jnp.float32(1.0 / (1 << 24))
    # Spike iff x >= rand  (matches torch: (x >= torch.rand_like(x)).float()).
    o_ref[...] = (x_ref[...] >= u).astype(jnp.float32)


def poisson_forward(x, seed: int = 0):
    """Pallas equivalent of Poisson.forward(x). Returns float32 array of x.shape."""
    orig_shape = x.shape
    flat = x.reshape(-1)
    if flat.dtype != jnp.float32:
        flat = flat.astype(jnp.float32)
    n = flat.shape[0]

    # Tile geometry: (tile_r, 1024) blocks, tile_r a multiple of 8, capped at 2 MiB.
    rows_needed = pl.cdiv(n, _LANE)
    tile_r = min(_MAX_TILE_ROWS, pl.cdiv(rows_needed, _SUBLANE) * _SUBLANE)
    rows = pl.cdiv(rows_needed, tile_r) * tile_r
    padded = rows * _LANE
    if padded != n:  # only materialize a padded copy when the shape truly needs it
        flat = jnp.pad(flat, (0, padded - n))
    x2 = flat.reshape(rows, _LANE)
    grid = rows // tile_r

    seed_arr = jnp.array([seed], dtype=jnp.int32)

    out2 = pl.pallas_call(
        _poisson_kernel,
        out_shape=jax.ShapeDtypeStruct((rows, _LANE), jnp.float32),
        grid_spec=pltpu.PrefetchScalarGridSpec(
            num_scalar_prefetch=1,  # seed -> SMEM
            grid=(grid,),
            in_specs=[pl.BlockSpec((tile_r, _LANE), lambda i, s: (i, 0))],
            out_specs=pl.BlockSpec((tile_r, _LANE), lambda i, s: (i, 0)),
        ),
        compiler_params=pltpu.CompilerParams(
            # Blocks are fully independent (stateless per-element PRNG) -> shard across
            # both TensorCores on v7x; harmless elsewhere.
            dimension_semantics=("parallel",),
        ),
    )(seed_arr, x2)

    out_flat = out2.reshape(-1)
    if padded != n:
        out_flat = out_flat[:n]
    return out_flat.reshape(orig_shape)


# TODO(synk): backward (straight-through gradient, returns grad_output unchanged) is not a
# kernel; it would be a custom_vjp identity in the surrounding JAX code.

if __name__ == "__main__":
    key = jax.random.PRNGKey(0)
    # Small NCHW-like input consistent with a typical Poisson-encoder usage.
    x = jax.random.uniform(key, (2, 4, 16, 16), dtype=jnp.float32)

    out = poisson_forward(x, seed=0)
    out = jax.block_until_ready(out)

    # Sanity checks: shape/dtype match, output is binary {0, 1}.
    assert out.shape == x.shape, (out.shape, x.shape)
    assert out.dtype == jnp.float32
    vals_binary = bool(jnp.all((out == 0.0) | (out == 1.0)))
    assert vals_binary, "output must be binary spikes"
    # Statistically, mean(out) should track mean(x) (E[1{x>=U}] = x for x in [0,1]).
    assert abs(float(out.mean()) - float(x.mean())) < 0.1

    # Determinism: same seed -> same spikes.
    out2 = jax.block_until_ready(poisson_forward(x, seed=0))
    assert bool(jnp.all(out == out2))

    print("KERNEL_OK")
</pallas_src>

<mosaic_0001>
module attributes {stable_mosaic.version = 11 : i64} {
  func.func @_poisson_kernel(%arg0: i32, %arg1: memref<1xi32, #tpu.memory_space<smem>>, %arg2: memref<8x1024xf32, #tpu.memory_space<vmem>>, %arg3: memref<8x1024xf32, #tpu.memory_space<vmem>>) attributes {dimension_semantics = [#tpu.dimension_semantics<parallel>], iteration_bounds = array<i64: 1>, scalar_prefetch = 1 : i64, scratch_operands = 0 : i64, tpu.core_type = #tpu.core_type<tc>, window_params = [{transform_indices = @transform_0, window_bounds = array<i64: 8, 1024>}, {transform_indices = @transform_1, window_bounds = array<i64: 8, 1024>}]} {
    %c0 = arith.constant 0 : index
    %0 = memref.load %arg1[%c0] : memref<1xi32, #tpu.memory_space<smem>>
    %1 = tpu.iota {dimensions = array<i32: 0>} : vector<8x1024xi32>
    %2 = tpu.iota {dimensions = array<i32: 1>} : vector<8x1024xi32>
    %c8192_i32 = arith.constant 8192 : i32
    %3 = arith.muli %arg0, %c8192_i32 : i32
    %c1024_i32 = arith.constant 1024 : i32
    %4 = vector.broadcast %c1024_i32 : i32 to vector<8x1024xi32>
    %5 = arith.muli %1, %4 : vector<8x1024xi32>
    %6 = vector.broadcast %3 : i32 to vector<8x1024xi32>
    %7 = arith.addi %6, %5 : vector<8x1024xi32>
    %8 = arith.addi %7, %2 : vector<8x1024xi32>
    %c-1640531527_i32 = arith.constant -1640531527 : i32
    %9 = vector.broadcast %c-1640531527_i32 : i32 to vector<8x1024xi32>
    %10 = arith.muli %8, %9 : vector<8x1024xi32>
    %c2146121005_i32 = arith.constant 2146121005 : i32
    %11 = arith.muli %0, %c2146121005_i32 : i32
    %12 = vector.broadcast %11 : i32 to vector<8x1024xi32>
    %13 = arith.addi %10, %12 : vector<8x1024xi32>
    %c1_i32 = arith.constant 1 : i32
    %14 = vector.broadcast %c1_i32 : i32 to vector<8x1024xi32>
    %15 = arith.addi %13, %14 : vector<8x1024xi32>
    %c16_i32 = arith.constant 16 : i32
    %16 = vector.broadcast %c16_i32 : i32 to vector<8x1024xi32>
    %17 = arith.shrui %15, %16 : vector<8x1024xi32>
    %18 = arith.xori %15, %17 : vector<8x1024xi32>
    %c-2048144789_i32 = arith.constant -2048144789 : i32
    %19 = vector.broadcast %c-2048144789_i32 : i32 to vector<8x1024xi32>
    %20 = arith.muli %18, %19 : vector<8x1024xi32>
    %c13_i32 = arith.constant 13 : i32
    %21 = vector.broadcast %c13_i32 : i32 to vector<8x1024xi32>
    %22 = arith.shrui %20, %21 : vector<8x1024xi32>
    %23 = arith.xori %20, %22 : vector<8x1024xi32>
    %c-1028477387_i32 = arith.constant -1028477387 : i32
    %24 = vector.broadcast %c-1028477387_i32 : i32 to vector<8x1024xi32>
    %25 = arith.muli %23, %24 : vector<8x1024xi32>
    %c16_i32_0 = arith.constant 16 : i32
    %26 = vector.broadcast %c16_i32_0 : i32 to vector<8x1024xi32>
    %27 = arith.shrui %25, %26 : vector<8x1024xi32>
    %28 = arith.xori %25, %27 : vector<8x1024xi32>
    %c1759714724_i32 = arith.constant 1759714724 : i32
    %29 = vector.broadcast %c1759714724_i32 : i32 to vector<8x1024xi32>
    %30 = arith.xori %28, %29 : vector<8x1024xi32>
    %c16_i32_1 = arith.constant 16 : i32
    %31 = vector.broadcast %c16_i32_1 : i32 to vector<8x1024xi32>
    %32 = arith.shrui %30, %31 : vector<8x1024xi32>
    %33 = arith.xori %30, %32 : vector<8x1024xi32>
    %c-2048144789_i32_2 = arith.constant -2048144789 : i32
    %34 = vector.broadcast %c-2048144789_i32_2 : i32 to vector<8x1024xi32>
    %35 = arith.muli %33, %34 : vector<8x1024xi32>
    %c13_i32_3 = arith.constant 13 : i32
    %36 = vector.broadcast %c13_i32_3 : i32 to vector<8x1024xi32>
    %37 = arith.shrui %35, %36 : vector<8x1024xi32>
    %38 = arith.xori %35, %37 : vector<8x1024xi32>
    %c-1028477387_i32_4 = arith.constant -1028477387 : i32
    %39 = vector.broadcast %c-1028477387_i32_4 : i32 to vector<8x1024xi32>
    %40 = arith.muli %38, %39 : vector<8x1024xi32>
    %c16_i32_5 = arith.constant 16 : i32
    %41 = vector.broadcast %c16_i32_5 : i32 to vector<8x1024xi32>
    %42 = arith.shrui %40, %41 : vector<8x1024xi32>
    %43 = arith.xori %40, %42 : vector<8x1024xi32>
    %c8_i32 = arith.constant 8 : i32
    %44 = vector.broadcast %c8_i32 : i32 to vector<8x1024xi32>
    %45 = arith.shrui %43, %44 : vector<8x1024xi32>
    %46 = arith.sitofp %45 : vector<8x1024xi32> to vector<8x1024xf32>
    %cst = arith.constant 5.96046448E-8 : f32
    %47 = vector.broadcast %cst : f32 to vector<8x1024xf32>
    %48 = arith.mulf %46, %47 : vector<8x1024xf32>
    %c0_6 = arith.constant 0 : index
    %c0_7 = arith.constant 0 : index
    %49 = vector.load %arg2[%c0_6, %c0_7] : memref<8x1024xf32, #tpu.memory_space<vmem>>, vector<8x1024xf32>
    %50 = arith.cmpf oge, %49, %48 : vector<8x1024xf32>
    %51 = arith.extui %50 : vector<8x1024xi1> to vector<8x1024xi32>
    %52 = arith.sitofp %51 : vector<8x1024xi32> to vector<8x1024xf32>
    %c0_8 = arith.constant 0 : index
    %c0_9 = arith.constant 0 : index
    %53 = vector.load %arg3[%c0_8, %c0_9] : memref<8x1024xf32, #tpu.memory_space<vmem>>, vector<8x1024xf32>
    tpu.vector_store %arg3[%c0_8, %c0_9], %52 {strides = array<i32>} : memref<8x1024xf32, #tpu.memory_space<vmem>>, vector<8x1024xf32>,
    return
  }
  func.func @transform_0(%arg0: i32, %arg1: memref<1xi32, #tpu.memory_space<smem>>) -> (i32, i32) {
    %c0_i32 = arith.constant 0 : i32
    %c0_i32_0 = arith.constant 0 : i32
    return %arg0, %c0_i32 : i32, i32
  }
  func.func @transform_1(%arg0: i32, %arg1: memref<1xi32, #tpu.memory_space<smem>>) -> (i32, i32) {
    %c0_i32 = arith.constant 0 : i32
    %c0_i32_0 = arith.constant 0 : i32
    return %arg0, %c0_i32 : i32, i32
  }
}

</mosaic_0001>

<bundles_post_ra>
// kernel: tpu_custom_call.1
= control target key start
LH: loop header
LB: loop body
LE: loop exit
PB: predicated region body
PF: predicated region fallthrough
CT: control target
= control target key end

     0   :  { %8 = vsyncpa [#allocation5], 0  ;;  %s392_s0 = inlined_call_operand.<no memory space> [shape: s32[1], index: 0, kind: input, shape index: {}]   ;;  %s393_s1 = inlined_call_operand.hbm [shape: f32[8,1024], index: 1, kind: input, shape index: {}]   ;;  %s394_s2 = inlined_call_operand.hbm [shape: f32[8,1024], index: 2, kind: output, shape index: {}]  }
   0x1   :  { %9 = vsyncpa [#allocation6], 0  ;;  %s347_s9 = smov [#allocation4]   ;;  %s299_s13 = scalar_lea.hbm %s393_s1, 1024 }
   0x2   :  { %s16_s10 = sshll.u32 %s347_s9, 4  ;;  %p300_p0 = scmp.ne.s32.totalorder %s393_s1, %s299_s13  ;;  %s17_s10 = int_to_ptr.vmem [resolvable:$true] %s16_s10 }
   0x3   :  { %p303_p1 = scmp.lt.u32.totalorder %s299_s13, %s393_s1 }
   0x5   :  { %p305_p2 = pnand %p303_p1, %p300_p0 }
   0x7   :  { %308 = shalt.err (!%p305_p2)
}
   0x8   :  { %s309_s18 = scalar_lea.vmem %s17_s10, 1024  ;;  %p314_p4 = scmp.lt.s32.totalorder %s17_s10, %s17_s10 }
   0x9   :  { %p310_p3 = scmp.ne.s32.totalorder %s17_s10, %s309_s18  ;;  %p315_p5 = scmp.lt.s32.totalorder %s309_s18, %s309_s18 }
   0xb   :  { %p316_p6 = por %p315_p5, %p314_p4 }
   0xd   :  { %p317_p7 = pnand %p316_p6, %p310_p3 }
   0xf   :  { %320 = shalt.err (!%p317_p7)
}
  0x10   :  { %19 = dma.hbm_to_vmem [thread:$0]  %s393_s1, 1024, %s17_s10, [#allocation5]  }
  0x11   :  { %343 = dma.done.wait [#allocation5], 1024  }
  0x12   :  { %344 = vsyncadd [#allocation5], 4294966272  ;;  %v24_v0 = vlaneseq  ;;  %s55_s23 = smul.u32 2146121005, %s392_s0  ;;  %s349_s0 = smov [#allocation7]  }
  0x13   :  { %s279_s1 = sshll.u32 %s349_s0, 4  ;;  %s280_s1 = int_to_ptr.vmem [resolvable:$true] %s279_s1 }
  0x14   :  { %v25_v1 = vshrl.u32 %v24_v0, 7  ;;  %v27_v2 = vand.u32 127, %v24_v0  ;;  %v56_v3 = vstv %s55_s23  ;;  %s321_s24 = scalar_lea.vmem %s280_s1, 1024  ;;  %p326_p9 = scmp.lt.s32.totalorder %s280_s1, %s280_s1 }
  0x15   :  { %p322_p8 = scmp.ne.s32.totalorder %s280_s1, %s321_s24  ;;  %p327_p10 = scmp.lt.s32.totalorder %s321_s24, %s321_s24 }
  0x16   :  { %v36_v4 = vmul.u32 1024, %v25_v1  ;;  %v28_v5 = vadd.s32 128, %v27_v2  ;;  %v29_v6 = vadd.s32 256, %v27_v2  ;;  %v30_v7 = vadd.s32 384, %v27_v2 }
  0x17   :  { %v31_v8 = vadd.s32 512, %v27_v2  ;;  %v32_v9 = vadd.s32 640, %v27_v2  ;;  %v33_v10 = vadd.s32 768, %v27_v2  ;;  %v34_v11 = vadd.s32 896, %v27_v2  ;;  %p328_p11 = por %p327_p10, %p326_p9 }
  0x18   :  { %v39_v12 = vadd.s32 %v36_v4, %v27_v2  ;;  %v40_v13 = vadd.s32 %v36_v4, %v28_v5  ;;  %v41_v14 = vadd.s32 %v36_v4, %v29_v6  ;;  %v42_v15 = vadd.s32 %v36_v4, %v30_v7 }
  0x19   :  { %v43_v16 = vadd.s32 %v36_v4, %v31_v8  ;;  %v44_v17 = vadd.s32 %v36_v4, %v32_v9  ;;  %v45_v18 = vadd.s32 %v36_v4, %v33_v10  ;;  %v46_v19 = vadd.s32 %v36_v4, %v34_v11  ;;  %p329_p12 = pnand %p328_p11, %p322_p8 }
  0x1a   :  { %v47_v20 = vmul.u32 2654435769, %v39_v12  ;;  %v48_v21 = vmul.u32 2654435769, %v40_v13 }
  0x1b   :  { %v49_v22 = vmul.u32 2654435769, %v41_v14  ;;  %v50_v23 = vmul.u32 2654435769, %v42_v15 }
  0x1c   :  { %v57_v24 = vadd.s32 %v56_v3, %v47_v20  ;;  %v58_v25 = vadd.s32 %v56_v3, %v48_v21  ;;  %v51_v26 = vmul.u32 2654435769, %v43_v16  ;;  %v52_v27 = vmul.u32 2654435769, %v44_v17 }
  0x1d   :  { %v59_v28 = vadd.s32 %v56_v3, %v49_v22  ;;  %v60_v29 = vadd.s32 %v56_v3, %v50_v23  ;;  %v53_v30 = vmul.u32 2654435769, %v45_v18  ;;  %v54_v31 = vmul.u32 2654435769, %v46_v19 }
  0x1e   :  { %v65_v32 = vadd.s32 1, %v57_v24  ;;  %v66_v33 = vadd.s32 1, %v58_v25  ;;  %v61_v34 = vadd.s32 %v56_v3, %v51_v26  ;;  %v62_v35 = vadd.s32 %v56_v3, %v52_v27 }
  0x1f   :  { %v67_v36 = vadd.s32 1, %v59_v28  ;;  %v68_v37 = vadd.s32 1, %v60_v29  ;;  %v63_v38 = vadd.s32 %v56_v3, %v53_v30  ;;  %v64_v39 = vadd.s32 %v56_v3, %v54_v31 }
  0x20   :  { %v73_v40 = vshrl.u32 %v65_v32, 16  ;;  %v74_v41 = vshrl.u32 %v66_v33, 16  ;;  %v69_v42 = vadd.s32 1, %v61_v34  ;;  %v70_v43 = vadd.s32 1, %v62_v35 }
  0x21   :  { %v75_v44 = vshrl.u32 %v67_v36, 16  ;;  %v76_v45 = vshrl.u32 %v68_v37, 16  ;;  %v71_v46 = vadd.s32 1, %v63_v38  ;;  %v72_v47 = vadd.s32 1, %v64_v39 }
  0x22   :  { %v81_v48 = vxor.u32 %v73_v40, %v65_v32  ;;  %v82_v49 = vxor.u32 %v74_v41, %v66_v33  ;;  %v77_v50 = vshrl.u32 %v69_v42, 16  ;;  %v78_v51 = vshrl.u32 %v70_v43, 16 }
  0x23   :  { %v83_v52 = vxor.u32 %v75_v44, %v67_v36  ;;  %v84_v53 = vxor.u32 %v76_v45, %v68_v37  ;;  %v79_v54 = vshrl.u32 %v71_v46, 16  ;;  %v80_v55 = vshrl.u32 %v72_v47, 16 }
  0x24   :  { %v89_v56 = vmul.u32 2246822507, %v81_v48  ;;  %v90_v57 = vmul.u32 2246822507, %v82_v49  ;;  %v85_v58 = vxor.u32 %v77_v50, %v69_v42  ;;  %v86_v59 = vxor.u32 %v78_v51, %v70_v43 }
  0x25   :  { %v91_v60 = vmul.u32 2246822507, %v83_v52  ;;  %v92_v61 = vmul.u32 2246822507, %v84_v53  ;;  %v87_v62 = vxor.u32 %v79_v54, %v71_v46  ;;  %v88_v63 = vxor.u32 %v80_v55, %v72_v47 }
  0x26   :  { %v97_v0 = vshrl.u32 %v89_v56, 13  ;;  %v98_v1 = vshrl.u32 %v90_v57, 13  ;;  %v93_v2 = vmul.u32 2246822507, %v85_v58  ;;  %v94_v3 = vmul.u32 2246822507, %v86_v59 }
  0x27   :  { %v99_v4 = vshrl.u32 %v91_v60, 13  ;;  %v100_v5 = vshrl.u32 %v92_v61, 13  ;;  %v95_v6 = vmul.u32 2246822507, %v87_v62  ;;  %v96_v7 = vmul.u32 2246822507, %v88_v63 }
  0x28   :  { %v105_v8 = vxor.u32 %v97_v0, %v89_v56  ;;  %v106_v9 = vxor.u32 %v98_v1, %v90_v57  ;;  %v101_v10 = vshrl.u32 %v93_v2, 13  ;;  %v102_v11 = vshrl.u32 %v94_v3, 13 }
  0x29   :  { %v107_v12 = vxor.u32 %v99_v4, %v91_v60  ;;  %v108_v13 = vxor.u32 %v100_v5, %v92_v61  ;;  %v103_v14 = vshrl.u32 %v95_v6, 13  ;;  %v104_v15 = vshrl.u32 %v96_v7, 13 }
  0x2a   :  { %v113_v16 = vmul.u32 3266489909, %v105_v8  ;;  %v114_v17 = vmul.u32 3266489909, %v106_v9  ;;  %v109_v18 = vxor.u32 %v101_v10, %v93_v2  ;;  %v110_v19 = vxor.u32 %v102_v11, %v94_v3 }
  0x2b   :  { %v115_v20 = vmul.u32 3266489909, %v107_v12  ;;  %v116_v21 = vmul.u32 3266489909, %v108_v13  ;;  %v111_v22 = vxor.u32 %v103_v14, %v95_v6  ;;  %v112_v23 = vxor.u32 %v104_v15, %v96_v7 }
  0x2c   :  { %v121_v24 = vshrl.u32 %v113_v16, 16  ;;  %v122_v25 = vshrl.u32 %v114_v17, 16  ;;  %v117_v26 = vmul.u32 3266489909, %v109_v18  ;;  %v118_v27 = vmul.u32 3266489909, %v110_v19 }
  0x2d   :  { %v123_v28 = vshrl.u32 %v115_v20, 16  ;;  %v124_v29 = vshrl.u32 %v116_v21, 16  ;;  %v119_v30 = vmul.u32 3266489909, %v111_v22  ;;  %v120_v31 = vmul.u32 3266489909, %v112_v23 }
  0x2e   :  { %v129_v32 = vxor.u32 %v121_v24, %v113_v16  ;;  %v130_v33 = vxor.u32 %v122_v25, %v114_v17  ;;  %v125_v34 = vshrl.u32 %v117_v26, 16  ;;  %v126_v35 = vshrl.u32 %v118_v27, 16 }
  0x2f   :  { %v131_v36 = vxor.u32 %v123_v28, %v115_v20  ;;  %v132_v37 = vxor.u32 %v124_v29, %v116_v21  ;;  %v127_v38 = vshrl.u32 %v119_v30, 16  ;;  %v128_v39 = vshrl.u32 %v120_v31, 16 }
  0x30   :  { %v137_v40 = vxor.u32 1759714724, %v129_v32  ;;  %v138_v41 = vxor.u32 1759714724, %v130_v33  ;;  %v133_v42 = vxor.u32 %v125_v34, %v117_v26  ;;  %v134_v43 = vxor.u32 %v126_v35, %v118_v27 }
  0x31   :  { %v139_v44 = vxor.u32 1759714724, %v131_v36  ;;  %v140_v45 = vxor.u32 1759714724, %v132_v37  ;;  %v135_v46 = vxor.u32 %v127_v38, %v119_v30  ;;  %v136_v47 = vxor.u32 %v128_v39, %v120_v31 }
  0x32   :  { %v145_v48 = vshrl.u32 %v137_v40, 16  ;;  %v146_v49 = vshrl.u32 %v138_v41, 16  ;;  %v141_v50 = vxor.u32 1759714724, %v133_v42  ;;  %v142_v51 = vxor.u32 1759714724, %v134_v43 }
  0x33   :  { %v147_v52 = vshrl.u32 %v139_v44, 16  ;;  %v148_v53 = vshrl.u32 %v140_v45, 16  ;;  %v143_v54 = vxor.u32 1759714724, %v135_v46  ;;  %v144_v55 = vxor.u32 1759714724, %v136_v47 }
  0x34   :  { %v153_v56 = vxor.u32 %v145_v48, %v137_v40  ;;  %v154_v57 = vxor.u32 %v146_v49, %v138_v41  ;;  %v149_v58 = vshrl.u32 %v141_v50, 16  ;;  %v150_v59 = vshrl.u32 %v142_v51, 16 }
  0x35   :  { %v155_v60 = vxor.u32 %v147_v52, %v139_v44  ;;  %v156_v61 = vxor.u32 %v148_v53, %v140_v45  ;;  %v151_v62 = vshrl.u32 %v143_v54, 16  ;;  %v152_v63 = vshrl.u32 %v144_v55, 16 }
  0x36   :  { %v161_v0 = vmul.u32 2246822507, %v153_v56  ;;  %v162_v1 = vmul.u32 2246822507, %v154_v57  ;;  %v157_v2 = vxor.u32 %v149_v58, %v141_v50  ;;  %v158_v3 = vxor.u32 %v150_v59, %v142_v51 }
  0x37   :  { %v163_v4 = vmul.u32 2246822507, %v155_v60  ;;  %v164_v5 = vmul.u32 2246822507, %v156_v61  ;;  %v159_v6 = vxor.u32 %v151_v62, %v143_v54  ;;  %v160_v7 = vxor.u32 %v152_v63, %v144_v55  ;;  %v233_v60 = vld [vmem:[#allocation4] sm:$0xff]  ;;  %v234_v61 = vld [vmem:[#allocation4 + $0x8] sm:$0xff] }
  0x38   :  { %v169_v8 = vshrl.u32 %v161_v0, 13  ;;  %v170_v9 = vshrl.u32 %v162_v1, 13  ;;  %v165_v10 = vmul.u32 2246822507, %v157_v2  ;;  %v166_v11 = vmul.u32 2246822507, %v158_v3 }
  0x39   :  { %v171_v12 = vshrl.u32 %v163_v4, 13  ;;  %v172_v13 = vshrl.u32 %v164_v5, 13  ;;  %v167_v14 = vmul.u32 2246822507, %v159_v6  ;;  %v168_v15 = vmul.u32 2246822507, %v160_v7 }
  0x3a   :  { %v177_v16 = vxor.u32 %v169_v8, %v161_v0  ;;  %v178_v17 = vxor.u32 %v170_v9, %v162_v1  ;;  %v173_v18 = vshrl.u32 %v165_v10, 13  ;;  %v174_v19 = vshrl.u32 %v166_v11, 13 }
  0x3b   :  { %v179_v20 = vxor.u32 %v171_v12, %v163_v4  ;;  %v180_v21 = vxor.u32 %v172_v13, %v164_v5  ;;  %v175_v22 = vshrl.u32 %v167_v14, 13  ;;  %v176_v23 = vshrl.u32 %v168_v15, 13  ;;  %v235_v4 = vld [vmem:[#allocation4 + $0x10] sm:$0xff]  ;;  %v236_v5 = vld [vmem:[#allocation4 + $0x18] sm:$0xff] }
  0x3c   :  { %v185_v24 = vmul.u32 3266489909, %v177_v16  ;;  %v186_v25 = vmul.u32 3266489909, %v178_v17  ;;  %v181_v26 = vxor.u32 %v173_v18, %v165_v10  ;;  %v182_v27 = vxor.u32 %v174_v19, %v166_v11  ;;  %v237_v10 = vld [vmem:[#allocation4 + $0x20] sm:$0xff]  ;;  %v238_v11 = vld [vmem:[#allocation4 + $0x28] sm:$0xff] }
  0x3d   :  { %v187_v28 = vmul.u32 3266489909, %v179_v20  ;;  %v188_v29 = vmul.u32 3266489909, %v180_v21  ;;  %v183_v30 = vxor.u32 %v175_v22, %v167_v14  ;;  %v184_v31 = vxor.u32 %v176_v23, %v168_v15  ;;  %v239_v21 = vld [vmem:[#allocation4 + $0x30] sm:$0xff]  ;;  %v240_v22 = vld [vmem:[#allocation4 + $0x38] sm:$0xff] }
  0x3e   :  { %v193_v32 = vshrl.u32 %v185_v24, 16  ;;  %v194_v33 = vshrl.u32 %v186_v25, 16  ;;  %v189_v34 = vmul.u32 3266489909, %v181_v26  ;;  %v190_v35 = vmul.u32 3266489909, %v182_v27 }
  0x3f   :  { %v195_v36 = vshrl.u32 %v187_v28, 16  ;;  %v196_v37 = vshrl.u32 %v188_v29, 16  ;;  %v191_v38 = vmul.u32 3266489909, %v183_v30  ;;  %v192_v39 = vmul.u32 3266489909, %v184_v31 }
  0x40   :  { %v201_v40 = vxor.u32 %v193_v32, %v185_v24  ;;  %v202_v41 = vxor.u32 %v194_v33, %v186_v25  ;;  %v197_v42 = vshrl.u32 %v189_v34, 16  ;;  %v198_v43 = vshrl.u32 %v190_v35, 16 }
  0x41   :  { %v203_v44 = vxor.u32 %v195_v36, %v187_v28  ;;  %v204_v45 = vxor.u32 %v196_v37, %v188_v29  ;;  %v199_v46 = vshrl.u32 %v191_v38, 16  ;;  %v200_v47 = vshrl.u32 %v192_v39, 16 }
  0x42   :  { %v209_v48 = vshrl.u32 %v201_v40, 8  ;;  %v210_v49 = vshrl.u32 %v202_v41, 8  ;;  %v205_v50 = vxor.u32 %v197_v42, %v189_v34  ;;  %v206_v51 = vxor.u32 %v198_v43, %v190_v35 }
  0x43   :  { %v211_v52 = vshrl.u32 %v203_v44, 8  ;;  %v212_v53 = vshrl.u32 %v204_v45, 8  ;;  %v207_v54 = vxor.u32 %v199_v46, %v191_v38  ;;  %v208_v55 = vxor.u32 %v200_v47, %v192_v39 }
  0x44   :  { %v217_v56 = vcvt.s32.f32 %v209_v48  ;;  %v218_v57 = vcvt.s32.f32 %v210_v49  ;;  %v213_v58 = vshrl.u32 %v205_v50, 8  ;;  %v214_v59 = vshrl.u32 %v206_v51, 8 }
  0x45   :  { %v219_v62 = vcvt.s32.f32 %v211_v52  ;;  %v220_v63 = vcvt.s32.f32 %v212_v53  ;;  %v215_v0 = vshrl.u32 %v207_v54, 8  ;;  %v216_v1 = vshrl.u32 %v208_v55, 8 }
  0x46   :  { %v225_v2 = vmul.f32 5.9604645e-08, %v217_v56  ;;  %v226_v3 = vmul.f32 5.9604645e-08, %v218_v57  ;;  %v221_v6 = vcvt.s32.f32 %v213_v58  ;;  %v222_v7 = vcvt.s32.f32 %v214_v59 }
  0x47   :  { %v227_v8 = vmul.f32 5.9604645e-08, %v219_v62  ;;  %v228_v9 = vmul.f32 5.9604645e-08, %v220_v63  ;;  %v223_v12 = vcvt.s32.f32 %v215_v0  ;;  %v224_v13 = vcvt.s32.f32 %v216_v1 }
  0x48   :  { %vm241_vm0 = vcmp.ge.f32.partialorder %v233_v60, %v225_v2  ;;  %vm242_vm1 = vcmp.ge.f32.partialorder %v234_v61, %v226_v3  ;;  %v229_v14 = vmul.f32 5.9604645e-08, %v221_v6  ;;  %v230_v15 = vmul.f32 5.9604645e-08, %v222_v7 }
  0x49   :  { %v348_v16 = vmov 0.0   ;;  %vm243_vm2 = vcmp.ge.f32.partialorder %v235_v4, %v227_v8  ;;  %vm244_vm3 = vcmp.ge.f32.partialorder %v236_v5, %v228_v9  ;;  %v231_v25 = vmul.f32 5.9604645e-08, %v223_v12 }
  0x4a   :  { %v288_v17 = vsel %vm241_vm0, 1.0, %v348_v16  ;;  %v289_v18 = vsel %vm242_vm1, 1.0, %v348_v16  ;;  %v290_v19 = vsel %vm243_vm2, 1.0, %v348_v16  ;;  %v291_v20 = vsel %vm244_vm3, 1.0, %v348_v16 }
  0x4b   :  { %265 = vst [vmem:[#allocation7] sm:$0xff] %v288_v17  ;;  %266 = vst [vmem:[#allocation7 + $0x8] sm:$0xff] %v289_v18  ;;  %vm245_vm4 = vcmp.ge.f32.partialorder %v237_v10, %v229_v14  ;;  %vm246_vm5 = vcmp.ge.f32.partialorder %v238_v11, %v230_v15  ;;  %v232_v26 = vmul.f32 5.9604645e-08, %v224_v13  ;;  %vm247_vm6 = vcmp.ge.f32.partialorder %v239_v21, %v231_v25 }
  0x4c   :  { %267 = vst [vmem:[#allocation7 + $0x10] sm:$0xff] %v290_v19  ;;  %268 = vst [vmem:[#allocation7 + $0x18] sm:$0xff] %v291_v20  ;;  %v292_v23 = vsel %vm245_vm4, 1.0, %v348_v16  ;;  %v293_v24 = vsel %vm246_vm5, 1.0, %v348_v16  ;;  %v294_v27 = vsel %vm247_vm6, 1.0, %v348_v16 }
  0x4d   :  { %269 = vst [vmem:[#allocation7 + $0x20] sm:$0xff] %v292_v23  ;;  %270 = vst [vmem:[#allocation7 + $0x28] sm:$0xff] %v293_v24  ;;  %vm248_vm7 = vcmp.ge.f32.partialorder %v240_v22, %v232_v26 }
  0x4e   :  { %v295_v28 = vsel %vm248_vm7, 1.0, %v348_v16  ;;  %271 = vst [vmem:[#allocation7 + $0x30] sm:$0xff] %v294_v27 }
  0x4f   :  { %272 = vst [vmem:[#allocation7 + $0x38] sm:$0xff] %v295_v28 }
  0x50   :  { %332 = shalt.err (!%p329_p12)
}
  0x51   :  { %s333_s27 = scalar_lea.hbm %s394_s2, 1024 }
  0x52   :  { %p334_p13 = scmp.ne.s32.totalorder %s394_s2, %s333_s27  ;;  %p337_p0 = scmp.lt.u32.totalorder %s333_s27, %s394_s2 }
  0x54   :  { %p339_p1 = pnand %p337_p0, %p334_p13 }
  0x56   :  { %342 = shalt.err (!%p339_p1)
}
  0x57   :  { %282 = dma.vmem_to_hbm [thread:$0]  %s280_s1, 1024, %s394_s2, [#allocation6]  }
  0x58   :  { %345 = dma.done.wait [#allocation6], 1024  }
  0x59   :  { %346 = vsyncadd [#allocation6], 4294966272 }
  0x5a   :  { %286 = vsyncpa [#allocation5], 1 }
  0x5b   :  { %287 = vsyncpa [#allocation6], 1 }

</bundles_post_ra>
